<compile_context>
chip_gen: v7x
topology: tpu7x:2x2x1
jax: 0.10.0
libtpu: 0.0.40
codegen_flags: <defaults>
</compile_context>

<pallas_src>
import math
import numpy as np

import jax
import jax.numpy as jnp
from jax.experimental import pallas as pl
from jax.experimental.pallas import tpu as pltpu


# ----------------------------------------------------------------------------
# Per-axis interpolation matrices (host-side numpy, tiny, built once per shape)
# ----------------------------------------------------------------------------
def _interp_matrix(n_in, n_out, mode, align_corners):
    """Matrix M (n_out, n_in) with  y = M @ x  matching F.interpolate per axis."""
    cols = np.arange(n_in)[None, :]
    if mode == "nearest":
        src = np.floor(np.arange(n_out) * (n_in / float(n_out))).astype(np.int64)
        src = np.clip(src, 0, n_in - 1)
        return (cols == src[:, None]).astype(np.float32)

    # bilinear (per-axis linear)
    if align_corners:
        if n_out == 1:
            pos = np.zeros((1,), np.float64)
        else:
            pos = np.arange(n_out) * ((n_in - 1) / float(n_out - 1))
    else:
        # Half-pixel centers, clamped below 0 as PyTorch does.
        # NOTE: uses the recomputed ratio n_in/n_out (exact for integer scale
        # factors); non-integer scales may differ from PyTorch by a sub-pixel
        # offset (PyTorch uses 1/scale_factor directly in that case).
        pos = (np.arange(n_out) + 0.5) * (n_in / float(n_out)) - 0.5
    pos = np.clip(pos, 0.0, n_in - 1)
    lo = np.floor(pos).astype(np.int64)
    hi = np.minimum(lo + 1, n_in - 1)
    frac = (pos - lo).astype(np.float64)
    return ((cols == lo[:, None]) * (1.0 - frac)[:, None]
            + (cols == hi[:, None]) * frac[:, None]).astype(np.float32)


# ----------------------------------------------------------------------------
# VMEM budgeting / tile selection
# ----------------------------------------------------------------------------
def _vmem_budget():
    """(block budget bytes, vmem_limit_bytes) from the local device's VMEM."""
    cap = None
    try:
        cap = getattr(pltpu.get_tpu_info(), "vmem_capacity_bytes", None)
    except Exception:
        cap = None
    if not cap:
        cap = 64 * 1024 * 1024          # v7x per-TensorCore VMEM (smallest gen)
    vmem_limit = int(min(cap * 3 // 4, 100 * 1024 * 1024))
    block_budget = vmem_limit // 2      # headroom for in-body f32 temporaries
    return block_budget, vmem_limit


def _round_up(n, m):
    return ((n + m - 1) // m) * m


def _choose_tiles(BC, Hin, Win, Hout, Wout, ebytes, budget):
    """Pick (tb rows of B*C, tp rows of Hout) so all blocks + scratch fit VMEM."""
    bc_cap = max(8, _round_up(BC, 8))

    def fits(tb, tp):
        inp = 2 * tb * Hin * Win * ebytes             # double-buffered input
        outp = 2 * tb * tp * Wout * ebytes            # double-buffered output
        wts = 2 * (Win * Wout + tp * Hin) * ebytes    # weight blocks
        scr = Hin * tb * Wout * ebytes                # W-pass scratch (1 buffer)
        tmp = 4 * (tb * Hin * Wout + tb * tp * Wout)  # rough f32 body temporaries
        return inp + outp + wts + scr + tmp <= budget

    # Cap tb so a large B*C yields >=4 "parallel" grid steps (keeps both v7x
    # TensorCores fed), but never below one 8-row sublane tile.
    tb_hi = min(bc_cap, 512, max(8, _round_up(-(-BC // 4), 8)))

    tps = [Hout] + sorted((d for d in range(8, Hout, 8) if Hout % d == 0),
                          reverse=True)
    for tp in tps:
        tb = tb_hi
        while tb >= 8:
            if fits(tb, tp):
                return tb, tp
            tb -= 8
    # Nothing fits the soft budget (gigantic planes): smallest tile, rely on
    # vmem_limit_bytes.
    return 8, tps[-1]


# ----------------------------------------------------------------------------
# Pallas kernel: fused separable resize (flat W pass + flat H pass)
# ----------------------------------------------------------------------------
def _resize_kernel(x_ref, ah_ref, awt_ref, o_ref, t_ref):
    """One (row-tile, Hout-tile) grid step."""
    tb, h_in, w_in = x_ref.shape
    w_out = awt_ref.shape[1]
    tp = ah_ref.shape[0]

    # ---- W pass: one flat MXU matmul; cached across the Hout-tile axis ------
    @pl.when(pl.program_id(1) == 0)
    def _():
        x = x_ref[...]                                              # (tb,Hin,Win)
        t = jnp.dot(x.reshape(tb * h_in, w_in), awt_ref[...],
                    preferred_element_type=jnp.float32)             # (tb*Hin,Wout)
        # Rearrange so the H pass is one flat matmul with N = tb*Wout.
        t = jnp.transpose(t.reshape(tb, h_in, w_out), (1, 0, 2))    # (Hin,tb,Wout)
        t_ref[...] = t.reshape(h_in, tb * w_out).astype(t_ref.dtype)

    # ---- H pass: (tp, Hin) @ (Hin, tb*Wout) — full-width N feeds the MXU ----
    o = jnp.dot(ah_ref[...], t_ref[...],
                preferred_element_type=jnp.float32)                 # (tp,tb*Wout)
    o = jnp.transpose(o.reshape(tp, tb, w_out), (1, 0, 2))          # (tb,tp,Wout)
    o_ref[...] = o.astype(o_ref.dtype).reshape(o_ref.shape)


# ----------------------------------------------------------------------------
# Wrapper
# ----------------------------------------------------------------------------
def interpolate(x_nchw, scale_factor, mode="bilinear", align_corners=False):
    """F.interpolate(x, scale_factor=..., mode=..., align_corners=...) in NCHW."""
    if mode not in ("nearest", "bilinear"):
        # TODO(synk): bicubic / trilinear / area modes are not implemented.
        raise NotImplementedError(f"mode={mode!r}")
    if isinstance(scale_factor, (tuple, list)):
        sh, sw = scale_factor
    else:
        sh = sw = scale_factor

    B, C, H, W = x_nchw.shape
    Hout = int(math.floor(H * sh))
    Wout = int(math.floor(W * sw))

    floating = jnp.issubdtype(x_nchw.dtype, jnp.floating)
    cdt = x_nchw.dtype if floating else jnp.float32     # compute / MXU dtype
    odt = x_nchw.dtype if floating else jnp.float32     # output dtype

    ah = jnp.asarray(_interp_matrix(H, Hout, mode, align_corners), dtype=cdt)
    awt = jnp.asarray(_interp_matrix(W, Wout, mode, align_corners).T, dtype=cdt)

    BC = B * C
    x3 = x_nchw.reshape(BC, H, W)
    if x3.dtype != cdt:
        x3 = x3.astype(cdt)                              # only for non-float input

    block_budget, vmem_limit = _vmem_budget()
    ebytes = jnp.dtype(cdt).itemsize
    tb, tp = _choose_tiles(BC, H, W, Hout, Wout, ebytes, block_budget)

    ni = -(-BC // tb)                                    # cdiv over row tiles
    nj = Hout // tp                                      # tp divides Hout
    BCp = ni * tb
    if BCp != BC:                                        # pad awkward B*C
        x3 = jnp.pad(x3, ((0, BCp - BC), (0, 0), (0, 0)))

    # Lane-dense output when Wout is narrower than a vreg row.
    flatten = (Wout % 128 != 0) and (tp == Hout or (tp * Wout) % 128 == 0)
    if flatten:
        out_arr = jax.ShapeDtypeStruct((BCp, Hout * Wout), odt)
        out_spec = pl.BlockSpec((tb, tp * Wout), lambda i, j: (i, j))
    else:
        out_arr = jax.ShapeDtypeStruct((BCp, Hout, Wout), odt)
        out_spec = pl.BlockSpec((tb, tp, Wout), lambda i, j: (i, j, 0))

    out = pl.pallas_call(
        _resize_kernel,
        out_shape=out_arr,
        grid=(ni, nj),
        in_specs=[
            pl.BlockSpec((tb, H, W), lambda i, j: (i, 0, 0)),   # row tile (resident over j)
            pl.BlockSpec((tp, H), lambda i, j: (j, 0)),         # Ah row block
            pl.BlockSpec((W, Wout), lambda i, j: (0, 0)),       # Aw^T (resident)
        ],
        out_specs=out_spec,
        scratch_shapes=[pltpu.VMEM((H, tb * Wout), cdt)],       # cached W pass
        compiler_params=pltpu.CompilerParams(
            dimension_semantics=("parallel", "arbitrary"),
            vmem_limit_bytes=int(vmem_limit)),
    )(x3, ah, awt)

    out = out.reshape(BCp, Hout, Wout)[:BC]
    return out.reshape(B, C, Hout, Wout)


class Interpolate:
    """Mirror of the PyTorch nn.Module."""

    def __init__(self, scale_factor, mode, align_corners):
        self.scale_factor = scale_factor
        self.mode = mode
        self.align_corners = align_corners

    def __call__(self, x):
        return interpolate(x, self.scale_factor, self.mode, self.align_corners)


# ----------------------------------------------------------------------------
if __name__ == "__main__":
    key = jax.random.PRNGKey(0)
    B, C, H, W = 2, 4, 16, 16
    x = jax.random.normal(key, (B, C, H, W), jnp.float32)

    # --- bilinear, scale_factor=2, align_corners=False -----------------------
    y = Interpolate(scale_factor=2, mode="bilinear", align_corners=False)(x)
    jax.block_until_ready(y)
    assert y.shape == (B, C, 2 * H, 2 * W)
    ah = jnp.asarray(_interp_matrix(H, 2 * H, "bilinear", False))
    aw = jnp.asarray(_interp_matrix(W, 2 * W, "bilinear", False))
    ref = jnp.einsum("ph,bchw,qw->bcpq", ah, x, aw)
    assert bool(jnp.allclose(y, ref, atol=1e-4)), "bilinear mismatch"

    # --- nearest, scale_factor=2 ---------------------------------------------
    yn = Interpolate(scale_factor=2, mode="nearest", align_corners=None)(x)
    jax.block_until_ready(yn)
    ref_n = jnp.repeat(jnp.repeat(x, 2, axis=2), 2, axis=3)
    assert bool(jnp.allclose(yn, ref_n, atol=1e-5)), "nearest mismatch"

    # --- bilinear, align_corners=True, B*C not a multiple of 8 (pad path) ----
    x2 = jax.random.normal(jax.random.split(key)[0], (1, 3, 8, 8), jnp.float32)
    y2 = Interpolate(scale_factor=2, mode="bilinear", align_corners=True)(x2)
    jax.block_until_ready(y2)
    ah2 = jnp.asarray(_interp_matrix(8, 16, "bilinear", True))
    ref2 = jnp.einsum("ph,bchw,qw->bcpq", ah2, x2, ah2)
    assert bool(jnp.allclose(y2, ref2, atol=1e-4)), "align_corners mismatch"

    print("KERNEL_OK")
</pallas_src>

<mosaic_0001>
module attributes {stable_mosaic.version = 11 : i64} {
  func.func @_resize_kernel(%arg0: i32, %arg1: i32, %arg2: memref<8x16x16xf32, #tpu.memory_space<vmem>>, %arg3: memref<32x16xf32, #tpu.memory_space<vmem>>, %arg4: memref<16x32xf32, #tpu.memory_space<vmem>>, %arg5: memref<8x1024xf32, #tpu.memory_space<vmem>>, %arg6: memref<16x256xf32, #tpu.memory_space<vmem>>) attributes {dimension_semantics = [#tpu.dimension_semantics<parallel>, #tpu.dimension_semantics<arbitrary>], iteration_bounds = array<i64: 1, 1>, scalar_prefetch = 0 : i64, scratch_operands = 1 : i64, tpu.core_type = #tpu.core_type<tc>, window_params = [{transform_indices = @transform_0, window_bounds = array<i64: 8, 16, 16>}, {transform_indices = @transform_1, window_bounds = array<i64: 32, 16>}, {pipeline_mode = #tpu.pipeline_mode<synchronous>, transform_indices = @transform_2, window_bounds = array<i64: 16, 32>}, {transform_indices = @transform_3, window_bounds = array<i64: 8, 1024>}]} {
    %c0_i32 = arith.constant 0 : i32
    %0 = arith.cmpi eq, %arg1, %c0_i32 : i32
    %1 = arith.extui %0 : i1 to i32
    %c0_i32_0 = arith.constant 0 : i32
    %2 = arith.cmpi ne, %1, %c0_i32_0 : i32
    scf.if %2 {
      %c0_6 = arith.constant 0 : index
      %c0_7 = arith.constant 0 : index
      %c0_8 = arith.constant 0 : index
      %10 = vector.load %arg2[%c0_6, %c0_7, %c0_8] : memref<8x16x16xf32, #tpu.memory_space<vmem>>, vector<8x16x16xf32>
      %11 = vector.shape_cast %10 : vector<8x16x16xf32> to vector<128x16xf32>
      %c0_9 = arith.constant 0 : index
      %c0_10 = arith.constant 0 : index
      %12 = vector.load %arg4[%c0_9, %c0_10] : memref<16x32xf32, #tpu.memory_space<vmem>>, vector<16x32xf32>
      %cst_11 = arith.constant dense<0.000000e+00> : vector<128x32xf32>
      %13 = tpu.matmul %11, %12, %cst_11 {dimension_numbers = #tpu.dot_dimension_numbers<[1], [0], [0], [1], [0, 0, 1, 1], [], []>} : vector<128x16xf32>, vector<16x32xf32>, vector<128x32xf32> -> vector<128x32xf32>
      %14 = vector.shape_cast %13 : vector<128x32xf32> to vector<8x16x32xf32>
      %15 = tpu.transpose %14, [1, 0, 2] : vector<8x16x32xf32> -> vector<16x8x32xf32>
      %16 = vector.shape_cast %15 : vector<16x8x32xf32> to vector<16x256xf32>
      %c0_12 = arith.constant 0 : index
      %c0_13 = arith.constant 0 : index
      %17 = vector.load %arg6[%c0_12, %c0_13] : memref<16x256xf32, #tpu.memory_space<vmem>>, vector<16x256xf32>
      tpu.vector_store %arg6[%c0_12, %c0_13], %16 {strides = array<i32>} : memref<16x256xf32, #tpu.memory_space<vmem>>, vector<16x256xf32>,
    } else {
    }
    %c0 = arith.constant 0 : index
    %c0_1 = arith.constant 0 : index
    %3 = vector.load %arg3[%c0, %c0_1] : memref<32x16xf32, #tpu.memory_space<vmem>>, vector<32x16xf32>
    %c0_2 = arith.constant 0 : index
    %c0_3 = arith.constant 0 : index
    %4 = vector.load %arg6[%c0_2, %c0_3] : memref<16x256xf32, #tpu.memory_space<vmem>>, vector<16x256xf32>
    %cst = arith.constant dense<0.000000e+00> : vector<32x256xf32>
    %5 = tpu.matmul %3, %4, %cst {dimension_numbers = #tpu.dot_dimension_numbers<[1], [0], [0], [1], [0, 0, 1, 1], [], []>} : vector<32x16xf32>, vector<16x256xf32>, vector<32x256xf32> -> vector<32x256xf32>
    %6 = vector.shape_cast %5 : vector<32x256xf32> to vector<32x8x32xf32>
    %7 = tpu.transpose %6, [1, 0, 2] : vector<32x8x32xf32> -> vector<8x32x32xf32>
    %8 = vector.shape_cast %7 : vector<8x32x32xf32> to vector<8x1024xf32>
    %c0_4 = arith.constant 0 : index
    %c0_5 = arith.constant 0 : index
    %9 = vector.load %arg5[%c0_4, %c0_5] : memref<8x1024xf32, #tpu.memory_space<vmem>>, vector<8x1024xf32>
    tpu.vector_store %arg5[%c0_4, %c0_5], %8 {strides = array<i32>} : memref<8x1024xf32, #tpu.memory_space<vmem>>, vector<8x1024xf32>,
    return
  }
  func.func @transform_0(%arg0: i32, %arg1: i32) -> (i32, i32, i32) {
    %c0_i32 = arith.constant 0 : i32
    %c0_i32_0 = arith.constant 0 : i32
    %c0_i32_1 = arith.constant 0 : i32
    return %arg0, %c0_i32, %c0_i32_0 : i32, i32, i32
  }
  func.func @transform_1(%arg0: i32, %arg1: i32) -> (i32, i32) {
    %c0_i32 = arith.constant 0 : i32
    %c0_i32_0 = arith.constant 0 : i32
    return %arg1, %c0_i32 : i32, i32
  }
  func.func @transform_2(%arg0: i32, %arg1: i32) -> (i32, i32) {
    %c0_i32 = arith.constant 0 : i32
    %c0_i32_0 = arith.constant 0 : i32
    %c0_i32_1 = arith.constant 0 : i32
    return %c0_i32, %c0_i32_0 : i32, i32
  }
  func.func @transform_3(%arg0: i32, %arg1: i32) -> (i32, i32) {
    %c0_i32 = arith.constant 0 : i32
    return %arg0, %arg1 : i32, i32
  }
}

</mosaic_0001>

<bundles_post_ra>
// kernel: tpu_custom_call.1
= control target key start
LH: loop header
LB: loop body
LE: loop exit
PB: predicated region body
PF: predicated region fallthrough
CT: control target
= control target key end

     0   :  { %8 = vsyncpa [#allocation4], 0  ;;  %s3912_s0 = inlined_call_operand.hbm [shape: f32[8,16,16], index: 0, kind: input, shape index: {}]   ;;  %s3913_s1 = inlined_call_operand.vmem [shape: f32[32,16], index: 1, kind: input, shape index: {}]   ;;  %s3914_s2 = inlined_call_operand.vmem [shape: f32[16,32], index: 2, kind: input, shape index: {}]   ;;  %s3915_s3 = inlined_call_operand.hbm [shape: f32[8,1024], index: 3, kind: output, shape index: {}]  }
   0x1   :  { %9 = vsyncpa [#allocation5], 0  ;;  %s3068_s12 = smov [#allocation3]   ;;  %s3020_s16 = scalar_lea.hbm %s3912_s0, 2048 }
   0x2   :  { %s15_s13 = sshll.u32 %s3068_s12, 4  ;;  %p3021_p0 = scmp.ne.s32.totalorder %s3912_s0, %s3020_s16  ;;  %s16_s13 = int_to_ptr.vmem [resolvable:$true] %s15_s13 }
   0x3   :  { %p3024_p1 = scmp.lt.u32.totalorder %s3020_s16, %s3912_s0 }
   0x5   :  { %p3026_p2 = pnand %p3024_p1, %p3021_p0 }
   0x7   :  { %3029 = shalt.err (!%p3026_p2)
}
   0x8   :  { %s3030_s21 = scalar_lea.vmem %s16_s13, 2048  ;;  %p3035_p4 = scmp.lt.s32.totalorder %s16_s13, %s16_s13 }
   0x9   :  { %p3031_p3 = scmp.ne.s32.totalorder %s16_s13, %s3030_s21  ;;  %p3036_p5 = scmp.lt.s32.totalorder %s3030_s21, %s3030_s21 }
   0xb   :  { %p3037_p6 = por %p3036_p5, %p3035_p4 }
   0xd   :  { %p3038_p7 = pnand %p3037_p6, %p3031_p3 }
   0xf   :  { %3041 = shalt.err (!%p3038_p7)
}
  0x10   :  { %s3069_s22 = smov 128   ;;  %s3070_s23 = smov 8  }
  0x11   :  { %21 = dma.hbm_to_vmem [thread:$0]  %s3912_s0, 2048, %s16_s13, [#allocation4], %s3069_s22, %s3069_s22, %s3070_s23  }
  0x12   :  { %3064 = dma.done.wait [#allocation4], 2048  }
  0x13   :  { %3065 = vsyncadd [#allocation4], 4294965248  ;;  %vm51_vm0 = vcmask 130048   ;;  %v49_v0 = vld [vmem:[%s3914_s2] sm:$0xff]  ;;  %v50_v1 = vld [vmem:[%s3914_s2 + $0x8] sm:$0xff]  ;;  %v250_v25 = vlaneseq  ;;  %s3073_s0 = smov 64  }
  0x14   :  { %v33_v2 = vld [vmem:[#allocation3] sm:$0xff]  ;;  %v2970_v3 = vpack.c.bf16 %v50_v1, %v49_v0  ;;  %v34_v5 = vld [vmem:[#allocation3 + $0x8] sm:$0xff]  ;;  %v35_v7 = vld [vmem:[#allocation3 + $0x10] sm:$0xff]  ;;  %v3071_v23 = vmov 1983009808   ;;  %s3074_s2 = smov 32  }
  0x15   :  { %2946 = vmatprep.mubr.msk.f32.mxu0 %vm51_vm0, %v33_v2  ;;  %v45_v4 = vld [vmem:[#allocation3 + $0x60] sm:$0xff]  ;;  %v46_v6 = vld [vmem:[#allocation3 + $0x68] sm:$0xff]  ;;  %v47_v8 = vld [vmem:[#allocation3 + $0x70] sm:$0xff]  ;;  %v248_v24 = vunpack.c.l.s4 %v3071_v23  ;;  %v3072_v30 = vmov 1934713408   ;;  %v251_v33 = vshrl.u32 %v250_v25, 7 }
  0x16   :  { %2971 = vmatprep.subr.bf16.mxu0 %v2970_v3  ;;  %2978 = vmatprep.subr.bf16.mxu1 %v2970_v3  ;;  %v36_v9 = vld [vmem:[#allocation3 + $0x18] sm:$0xff]  ;;  %v37_v11 = vld [vmem:[#allocation3 + $0x20] sm:$0xff]  ;;  %v38_v12 = vld [vmem:[#allocation3 + $0x28] sm:$0xff]  ;;  %v312_v31 = vunpack.c.l.s4 %v3072_v30  ;;  %s3076_s30 = smov 96   ;;  %vm837_vm1 = vcmask 261120   ;;  %vm840_vm2 = vcmask 523264  }
  0x17   :  { %2973 = vmatpush3.bf16.msra.mxu0 %v2970_v3  ;;  %2979 = vmatpush3.bf16.msra.mxu1 %v2970_v3  ;;  %v48_v10 = vld [vmem:[#allocation3 + $0x78] sm:$0xff]  ;;  %v39_v13 = vld [vmem:[#allocation3 + $0x30] sm:$0xff]  ;;  %v41_v15 = vld [vmem:[#allocation3 + $0x40] sm:$0xff]  ;;  %v249_v32 = vunpack.c.0.s8 %v248_v24  ;;  %vm843_vm3 = vcmask 785408  }
  0x18   :  { %2964 = vmatprep.mubr.msk.f32.mxu1 %vm51_vm0, %v45_v4  ;;  %v40_v14 = vld [vmem:[#allocation3 + $0x38] sm:$0xff]  ;;  %v42_v16 = vld [vmem:[#allocation3 + $0x48] sm:$0xff]  ;;  %v43_v17 = vld [vmem:[#allocation3 + $0x50] sm:$0xff]  ;;  %v313_v40 = vunpack.c.0.s8 %v312_v31 }
  0x19   :  { %v44_v18 = vld [vmem:[#allocation3 + $0x58] sm:$0xff]  ;;  %v3140_v41 = vsub.s32 %v249_v32, %v251_v33 }
  0x1a   :  { %2947 = vmatmul.mubr.msk.f32.vlgmr.msra.gmra.mrb[0].mxu0 %vm51_vm0, %v34_v5  ;;  %2965 = vmatmul.mubr.msk.f32.vlgmr.msra.gmra.mrb[0].mxu1 %vm51_vm0, %v46_v6  ;;  %v3142_v46 = vsub.s32 %v313_v40, %v251_v33 }
  0x1b   :  { %2949 = vmatprep.mubr.msk.f32.mxu0 %vm51_vm0, %v35_v7  ;;  %2967 = vmatprep.mubr.msk.f32.mxu1 %vm51_vm0, %v47_v8 }
  0x1e   :  { %2950 = vmatmul.mubr.msk.f32.gmra.mrb[2].mxu0 %vm51_vm0, %v36_v9  ;;  %2968 = vmatmul.mubr.msk.f32.gmra.mrb[2].mxu1 %vm51_vm0, %v48_v10 }
  0x1f   :  { %2952 = vmatprep.mubr.msk.f32.mxu0 %vm51_vm0, %v37_v11 }
  0x22   :  { %2953 = vmatmul.mubr.msk.f32.gmra.mrb[4].mxu0 %vm51_vm0, %v38_v12 }
  0x23   :  { %2955 = vmatprep.mubr.msk.f32.mxu0 %vm51_vm0, %v39_v13 }
  0x26   :  { %2956 = vmatmul.mubr.msk.f32.gmra.mrb[6].mxu0 %vm51_vm0, %v40_v14 }
  0x27   :  { %2958 = vmatprep.mubr.msk.f32.mxu0 %vm51_vm0, %v41_v15 }
  0x2a   :  { %2959 = vmatmul.mubr.msk.f32.gmra.mrb[8].mxu0 %vm51_vm0, %v42_v16 }
  0x2b   :  { %2961 = vmatprep.mubr.msk.f32.mxu0 %vm51_vm0, %v43_v17 }
  0x2e   :  { %2962 = vmatmul.mubr.msk.f32.gmra.mrb[10].mxu0 %vm51_vm0, %v44_v18 }
  0xed   :  { %v2948_v19 = vpop.f32.mrb[0].mxu0  ;;  %v3132_v20 = vpop.f32.mrb[0].mxu1 }
  0xee   :  { %v166_v21 = vpop.f32.mrb[1].mxu0  ;;  %v3134_v22 = vpop.f32.mrb[1].mxu1 }
  0xf1   :  { %v2951_v26 = vpop.f32.mrb[2].mxu0  ;;  %v3136_v27 = vpop.f32.mrb[2].mxu1 }
  0xf2   :  { %v176_v28 = vpop.f32.mrb[3].mxu0  ;;  %v3138_v29 = vpop.f32.mrb[3].mxu1 }
  0xf5   :  { %v2954_v34 = vpop.f32.mrb[4].mxu0 }
  0xf6   :  { %v381_v35 = vcombine.low %v2948_v19, %v2954_v34  ;;  %v382_v36 = vcombine.high %v2948_v19, %v2954_v34  ;;  %v186_v37 = vpop.f32.mrb[5].mxu0 }
  0xf7   :  { %v245_v38 = vcombine.low %v166_v21, %v186_v37  ;;  %v246_v39 = vcombine.high %v166_v21, %v186_v37 }
  0xf8   :  { %v389_v49 = vrot.slane %v381_v35, %v3140_v41  ;;  %v396_v50 = vrot.slane %v382_v36, %v3140_v41 }
  0xf9   :  { %v2957_v42 = vpop.f32.mrb[6].mxu0  ;;  %v253_v53 = vrot.slane %v245_v38, %v3140_v41  ;;  %v260_v54 = vrot.slane %v246_v39, %v3140_v41 }
  0xfa   :  { %v397_v43 = vcombine.low %v2951_v26, %v2957_v42  ;;  %v398_v44 = vcombine.high %v2951_v26, %v2957_v42  ;;  %v196_v45 = vpop.f32.mrb[7].mxu0 }
  0xfb   :  { %v261_v47 = vcombine.low %v176_v28, %v196_v45  ;;  %v262_v48 = vcombine.high %v176_v28, %v196_v45 }
  0xfc   :  { %v405_v51 = vrot.slane %v397_v43, %v3140_v41  ;;  %v412_v52 = vrot.slane %v398_v44, %v3140_v41 }
  0xfd   :  { %v269_v55 = vrot.slane %v261_v47, %v3140_v41  ;;  %v276_v56 = vrot.slane %v262_v48, %v3140_v41  ;;  %v2960_v57 = vpop.f32.mrb[8].mxu0 }
  0xfe   :  { %v445_v58 = vcombine.low %v389_v49, %v405_v51  ;;  %v446_v59 = vcombine.high %v389_v49, %v405_v51  ;;  %v461_v60 = vcombine.low %v396_v50, %v412_v52  ;;  %v462_v61 = vcombine.high %v396_v50, %v412_v52  ;;  %v206_v62 = vpop.f32.mrb[9].mxu0 }
  0xff   :  { %v309_v63 = vcombine.low %v253_v53, %v269_v55  ;;  %v310_v0 = vcombine.high %v253_v53, %v269_v55  ;;  %v325_v1 = vcombine.low %v260_v54, %v276_v56  ;;  %v326_v2 = vcombine.high %v260_v54, %v276_v56 }
 0x100   :  { %v3153_v3 = vrot.slane %v445_v58, %v3142_v46  ;;  %v3156_v4 = vrot.slane %v446_v59, %v3142_v46  ;;  %v3159_v5 = vrot.slane %v461_v60, %v3142_v46  ;;  %v3162_v6 = vrot.slane %v462_v61, %v3142_v46 }
 0x101   :  { %v317_v7 = vrot.slane %v309_v63, %v3142_v46  ;;  %v324_v8 = vrot.slane %v310_v0, %v3142_v46  ;;  %v333_v9 = vrot.slane %v325_v1, %v3142_v46  ;;  %v340_v10 = vrot.slane %v326_v2, %v3142_v46  ;;  %v2963_v11 = vpop.f32.mrb[10].mxu0 }
 0x102   :  { %v2848_v12 = vcombine.low %v3153_v3, %v3156_v4  ;;  %v2850_v13 = vcombine.high %v3153_v3, %v3156_v4  ;;  %v2852_v14 = vcombine.low %v3159_v5, %v3162_v6  ;;  %v2854_v15 = vcombine.high %v3159_v5, %v3162_v6  ;;  %v216_v16 = vpop.f32.mrb[11].mxu0 }
 0x103   :  { %v2840_v17 = vcombine.low %v317_v7, %v324_v8  ;;  %v2842_v18 = vcombine.high %v317_v7, %v324_v8  ;;  %v2844_v19 = vcombine.low %v333_v9, %v340_v10  ;;  %v2846_v21 = vcombine.high %v333_v9, %v340_v10 }
 0x104   :  { %v413_v23 = vcombine.low %v2960_v57, %v3132_v20  ;;  %v414_v24 = vcombine.high %v2960_v57, %v3132_v20  ;;  %v277_v25 = vcombine.low %v206_v62, %v3134_v22  ;;  %v278_v26 = vcombine.high %v206_v62, %v3134_v22 }
 0x105   :  { %v429_v28 = vcombine.low %v2963_v11, %v3136_v27  ;;  %v430_v30 = vcombine.high %v2963_v11, %v3136_v27  ;;  %v293_v31 = vcombine.low %v216_v16, %v3138_v29  ;;  %v294_v32 = vcombine.high %v216_v16, %v3138_v29 }
 0x106   :  { %v421_v33 = vrot.slane %v413_v23, %v3140_v41  ;;  %v428_v34 = vrot.slane %v414_v24, %v3140_v41  ;;  %v285_v35 = vrot.slane %v277_v25, %v3140_v41  ;;  %v292_v20 = vrot.slane %v278_v26, %v3140_v41 }
 0x107   :  { %v437_v36 = vrot.slane %v429_v28, %v3140_v41  ;;  %v444_v22 = vrot.slane %v430_v30, %v3140_v41  ;;  %v301_v37 = vrot.slane %v293_v31, %v3140_v41  ;;  %v308_v27 = vrot.slane %v294_v32, %v3140_v41 }
 0x108   :  { %v525_v38 = vrot.slane %v2840_v17, %v3140_v41  ;;  %v541_v29 = vrot.slane %v2842_v18, %v3140_v41  ;;  %v557_v39 = vrot.slane %v2844_v19, %v3140_v41  ;;  %v573_v40 = vrot.slane %v2846_v21, %v3140_v41 }
 0x109   :  { %v477_v42 = vcombine.low %v421_v33, %v437_v36  ;;  %v478_v43 = vcombine.high %v421_v33, %v437_v36  ;;  %v493_v44 = vcombine.low %v428_v34, %v444_v22  ;;  %v494_v45 = vcombine.high %v428_v34, %v444_v22 }
 0x10a   :  { %v341_v47 = vcombine.low %v285_v35, %v301_v37  ;;  %v342_v48 = vcombine.high %v285_v35, %v301_v37  ;;  %v357_v49 = vcombine.low %v292_v20, %v308_v27  ;;  %v358_v50 = vcombine.high %v292_v20, %v308_v27 }
 0x10b   :  { %v485_v51 = vrot.slane %v477_v42, %v3142_v46  ;;  %v492_v52 = vrot.slane %v478_v43, %v3142_v46  ;;  %v501_v53 = vrot.slane %v493_v44, %v3142_v46  ;;  %v508_v54 = vrot.slane %v494_v45, %v3142_v46 }
 0x10c   :  { %v349_v55 = vrot.slane %v341_v47, %v3142_v46  ;;  %v356_v56 = vrot.slane %v342_v48, %v3142_v46  ;;  %v365_v57 = vrot.slane %v357_v49, %v3142_v46  ;;  %v372_v58 = vrot.slane %v358_v50, %v3142_v46 }
 0x10d   :  { %v2849_v59 = vcombine.low %v485_v51, %v492_v52  ;;  %v2851_v60 = vcombine.high %v485_v51, %v492_v52  ;;  %v2853_v61 = vcombine.low %v501_v53, %v508_v54  ;;  %v2855_v62 = vcombine.high %v501_v53, %v508_v54 }
 0x10e   :  { %v2841_v63 = vcombine.low %v349_v55, %v356_v56  ;;  %v2843_v0 = vcombine.high %v349_v55, %v356_v56  ;;  %v2845_v1 = vcombine.low %v365_v57, %v372_v58  ;;  %v2847_v2 = vcombine.high %v365_v57, %v372_v58 }
 0x10f   :  { %v668_v7 = vrot.slane %v2849_v59, %v3140_v41  ;;  %v684_v8 = vrot.slane %v2851_v60, %v3140_v41  ;;  %v700_v9 = vrot.slane %v2853_v61, %v3140_v41  ;;  %v716_v10 = vrot.slane %v2855_v62, %v3140_v41 }
 0x110   :  { %v532_v11 = vrot.slane %v2841_v63, %v3140_v41  ;;  %v548_v16 = vrot.slane %v2843_v0, %v3140_v41  ;;  %v564_v17 = vrot.slane %v2845_v1, %v3140_v41  ;;  %v580_v18 = vrot.slane %v2847_v2, %v3140_v41 }
 0x111   :  { %v582_v19 = vcombine.high %v525_v38, %v541_v29  ;;  %v614_v21 = vcombine.high %v557_v39, %v573_v40  ;;  %v661_v23 = vrot.slane %v2848_v12, %v3140_v41  ;;  %v677_v24 = vrot.slane %v2850_v13, %v3140_v41 }
 0x112   :  { %v693_v25 = vrot.slane %v2852_v14, %v3140_v41  ;;  %v709_v26 = vrot.slane %v2854_v15, %v3140_v41  ;;  %v581_v28 = vcombine.low %v525_v38, %v541_v29  ;;  %v613_v30 = vcombine.low %v557_v39, %v573_v40 }
 0x113   :  { %v596_v31 = vrot.slane %v582_v19, %v3142_v46  ;;  %v628_v12 = vrot.slane %v614_v21, %v3142_v46  ;;  %v718_v32 = vcombine.high %v661_v23, %v677_v24  ;;  %v717_v33 = vcombine.low %v661_v23, %v677_v24 }
 0x114   :  { %v750_v3 = vcombine.high %v693_v25, %v709_v26  ;;  %v3231_v4 = vrot.slane %v581_v28, %v3142_v46  ;;  %v3234_v13 = vrot.slane %v613_v30, %v3142_v46  ;;  %v749_v14 = vcombine.low %v693_v25, %v709_v26 }
 0x115   :  { %v647_v34 = vcombine.low %v596_v31, %v628_v12  ;;  %v732_v5 = vrot.slane %v718_v32, %v3142_v46  ;;  %v725_v6 = vrot.slane %v717_v33, %v3142_v46  ;;  %v598_v15 = vcombine.high %v532_v11, %v548_v16 }
 0x116   :  { %v764_v35 = vrot.slane %v750_v3, %v3142_v46  ;;  %v646_v20 = vcombine.high %v3231_v4, %v3234_v13  ;;  %v757_v36 = vrot.slane %v749_v14, %v3142_v46  ;;  %v645_v22 = vcombine.low %v3231_v4, %v3234_v13 }
 0x117   :  { %v612_v37 = vrot.slane %v598_v15, %v3142_v46  ;;  %v630_v27 = vcombine.high %v564_v17, %v580_v18  ;;  %v734_v38 = vcombine.high %v668_v7, %v684_v8  ;;  %v766_v29 = vcombine.high %v700_v9, %v716_v10 }
 0x118   :  { %v783_v39 = vcombine.low %v732_v5, %v764_v35  ;;  %v781_v40 = vcombine.low %v725_v6, %v757_v36  ;;  %v782_v42 = vcombine.high %v725_v6, %v757_v36  ;;  %v597_v43 = vcombine.low %v532_v11, %v548_v16 }
 0x119   :  { %v644_v44 = vrot.slane %v630_v27, %v3142_v46  ;;  %v748_v45 = vrot.slane %v734_v38, %v3142_v46  ;;  %v780_v47 = vrot.slane %v766_v29, %v3142_v46  ;;  %v629_v48 = vcombine.low %v564_v17, %v580_v18 }
 0x11a   :  { %v2995_v49 = vpack.i.bf16 %v783_v39, %v647_v34  ;;  %v2990_v50 = vpack.i.bf16 %v782_v42, %v646_v20  ;;  %v605_v51 = vrot.slane %v597_v43, %v3142_v46  ;;  %v733_v52 = vcombine.low %v668_v7, %v684_v8  ;;  %v857_v42 = vld [vmem:[%s3913_s1 + $0x8] sm:$0xff]  ;;  %v858_v43 = vld [vmem:[%s3913_s1 + $0x10] sm:$0xff] }
 0x11b   :  { %v651_v53 = vcombine.low %v612_v37, %v644_v44  ;;  %v787_v54 = vcombine.low %v748_v45, %v780_v47  ;;  %v637_v55 = vrot.slane %v629_v48, %v3142_v46  ;;  %v765_v56 = vcombine.low %v700_v9, %v716_v10 }
 0x11c   :  { %2996 = vrot.lane.b32.xlu1 %v2995_v49, %s3073_s0  ;;  %2991 = vrot.lane.b32.xlu0 %v2990_v50, %s3074_s2  ;;  %v741_v57 = vrot.slane %v733_v52, %v3142_v46  ;;  %v648_v58 = vcombine.high %v596_v31, %v628_v12  ;;  %v784_v59 = vcombine.high %v732_v5, %v764_v35  ;;  %v3075_v11 = vmov 0.0  }
 0x11d   :  { %v3005_v60 = vpack.i.bf16 %v787_v54, %v651_v53  ;;  %v650_v61 = vcombine.high %v605_v51, %v637_v55  ;;  %v773_v62 = vrot.slane %v765_v56, %v3142_v46  ;;  %v649_v63 = vcombine.low %v605_v51, %v637_v55  ;;  %941 = vmatprep.mubr.f32.mxu1 %v3075_v11 }
 0x11e   :  { %v3015_v0 = vpack.i.bf16 %v784_v59, %v648_v58  ;;  %v652_v1 = vcombine.high %v612_v37, %v644_v44  ;;  %v788_v2 = vcombine.high %v748_v45, %v780_v47  ;;  %v859_v44 = vld [vmem:[%s3913_s1 + $0x18] sm:$0xff] }
 0x11f   :  { %v785_v7 = vcombine.low %v741_v57, %v773_v62  ;;  %v786_v8 = vcombine.high %v741_v57, %v773_v62 }
 0x120   :  { %3006 = vrot.lane.b32.xlu1 %v3005_v60, %s3073_s0  ;;  %v3010_v9 = vpack.i.bf16 %v788_v2, %v652_v1 }
 0x121   :  { %v3000_v10 = vpack.i.bf16 %v786_v8, %v650_v61 }
 0x123   :  { %3001 = vrot.lane.b32.xlu0 %v3000_v10, %s3074_s2 }
 0x124   :  { %3016 = vrot.lane.b32.xlu1 %v3015_v0, %s3076_s30 }
 0x127   :  { %3011 = vrot.lane.b32.xlu0 %v3010_v9, %s3076_s30 }
 0x18e   :  { %v2997_v16 = vpop.permute.xlu1 %2996  ;;  %v2992_v17 = vpop.permute.xlu0 %2991 }
 0x18f   :  { %v2994_v18 = vunpack.i.h.bf16 %v2992_v17  ;;  %v2993_v19 = vunpack.i.l.bf16 %v2992_v17  ;;  %v2999_v23 = vunpack.i.h.bf16 %v2997_v16  ;;  %v2998_v24 = vunpack.i.l.bf16 %v2997_v16 }
 0x191   :  { %v839_v25 = vsel %vm837_vm1, %v781_v40, %v2994_v18  ;;  %v838_v26 = vsel %vm837_vm1, %v645_v22, %v2993_v19  ;;  %v856_v40 = vld [vmem:[%s3913_s1] sm:$0xff]  ;;  %s3077_s1 = smov [#allocation6]  }
 0x192   :  { %v3007_v21 = vpop.permute.xlu1 %3006  ;;  %v841_v34 = vsel %vm840_vm2, %v838_v26, %v2998_v24  ;;  %v842_v5 = vsel %vm840_vm2, %v839_v25, %v2999_v23  ;;  %s2815_s12 = sshll.u32 %s3077_s1, 4  ;;  %s2816_s12 = int_to_ptr.vmem [resolvable:$true] %s2815_s12 }
 0x193   :  { %v3009_v32 = vunpack.i.h.bf16 %v3007_v21  ;;  %v3008_v33 = vunpack.i.l.bf16 %v3007_v21  ;;  %s3042_s13 = scalar_lea.vmem %s2816_s12, 1024  ;;  %p3047_p9 = scmp.lt.s32.totalorder %s2816_s12, %s2816_s12 }
 0x194   :  { %p3043_p8 = scmp.ne.s32.totalorder %s2816_s12, %s3042_s13  ;;  %p3048_p10 = scmp.lt.s32.totalorder %s3042_s13, %s3042_s13 }
 0x195   :  { %v3002_v28 = vpop.permute.xlu0 %3001 }
 0x196   :  { %v3004_v30 = vunpack.i.h.bf16 %v3002_v28  ;;  %v3003_v31 = vunpack.i.l.bf16 %v3002_v28  ;;  %v3017_v12 = vpop.permute.xlu1 %3016  ;;  %p3049_p11 = por %p3048_p10, %p3047_p9 }
 0x197   :  { %v3019_v3 = vunpack.i.h.bf16 %v3017_v12  ;;  %v3018_v4 = vunpack.i.l.bf16 %v3017_v12 }
 0x198   :  { %v847_v13 = vsel %vm837_vm1, %v785_v7, %v3004_v30  ;;  %v846_v14 = vsel %vm837_vm1, %v649_v63, %v3003_v31  ;;  %p3050_p12 = pnand %p3049_p11, %p3043_p8 }
 0x199   :  { %v845_v6 = vsel %vm843_vm3, %v842_v5, %v3019_v3  ;;  %v844_v15 = vsel %vm843_vm3, %v841_v34, %v3018_v4  ;;  %v3012_v35 = vpop.permute.xlu0 %3011  ;;  %v848_v37 = vsel %vm840_vm2, %v846_v14, %v3008_v33  ;;  %v849_v27 = vsel %vm840_vm2, %v847_v13, %v3009_v32 }
 0x19a   :  { %v2976_v20 = vpack.c.bf16 %v845_v6, %v844_v15  ;;  %v3014_v36 = vunpack.i.h.bf16 %v3012_v35  ;;  %v3013_v22 = vunpack.i.l.bf16 %v3012_v35 }
 0x19c   :  { %v850_v38 = vsel %vm843_vm3, %v848_v37, %v3013_v22  ;;  %v851_v29 = vsel %vm843_vm3, %v849_v27, %v3014_v36 }
 0x19d   :  { %v2974_v39 = vpack.c.bf16 %v851_v29, %v850_v38 }
 0x19f   :  { %2975 = vmatprep.subr.bf16.mxu1 %v2974_v39 }
 0x1a0   :  { %2977 = vmatpush1.bf16.msra.mxu1 %v2976_v20 }
 0x1a3   :  { %2856 = vmatmul.mubr.msk.f32.vlgmr.msra.gmra.mrb[4].mxu1 %vm51_vm0, %v856_v40 }
 0x1a4   :  { %947 = vmatprep.mubr.f32.mxu1 %v3075_v11 }
 0x1a7   :  { %2857 = vmatmul.mubr.msk.f32.gmra.mrb[6].mxu1 %vm51_vm0, %v857_v42 }
 0x1a8   :  { %953 = vmatprep.mubr.f32.mxu1 %v3075_v11 }
 0x1ab   :  { %2858 = vmatmul.mubr.msk.f32.gmra.mrb[8].mxu1 %vm51_vm0, %v858_v43 }
 0x1ac   :  { %959 = vmatprep.mubr.f32.mxu1 %v3075_v11 }
 0x1af   :  { %2859 = vmatmul.mubr.msk.f32.gmra.mrb[10].mxu1 %vm51_vm0, %v859_v44 }
 0x276   :  { %v943_v45 = vpop.f32.mrb[4].mxu1 }
 0x277   :  { %970 = vrot.lane.b32.xlu0 %v943_v45, %s3076_s30  ;;  %v3287_v47 = vpop.f32.mrb[5].mxu1 }
 0x27a   :  { %v949_v48 = vpop.f32.mrb[6].mxu1 }
 0x27b   :  { %982 = vrot.lane.b32.xlu0 %v943_v45, %s3073_s0  ;;  %972 = vrot.lane.b32.xlu1 %v949_v48, %s3076_s30  ;;  %v3291_v49 = vpop.f32.mrb[7].mxu1 }
 0x27e   :  { %v3293_v50 = vpop.f32.mrb[8].mxu1 }
 0x27f   :  { %994 = vrot.lane.b32.xlu0 %v943_v45, %s3074_s2  ;;  %984 = vrot.lane.b32.xlu1 %v949_v48, %s3073_s0  ;;  %v3297_v51 = vpop.f32.mrb[9].mxu1 }
 0x282   :  { %v3299_v52 = vpop.f32.mrb[10].mxu1 }
 0x283   :  { %1010 = vrot.lane.b32.xlu0 %v3287_v47, %s3076_s30  ;;  %996 = vrot.lane.b32.xlu1 %v949_v48, %s3074_s2  ;;  %v3304_v53 = vpop.f32.mrb[11].mxu1 }
 0x287   :  { %1022 = vrot.lane.b32.xlu0 %v3287_v47, %s3073_s0  ;;  %1012 = vrot.lane.b32.xlu1 %v3291_v49, %s3076_s30 }
 0x28b   :  { %1034 = vrot.lane.b32.xlu0 %v3287_v47, %s3074_s2  ;;  %1024 = vrot.lane.b32.xlu1 %v3291_v49, %s3073_s0 }
 0x28f   :  { %1036 = vrot.lane.b32.xlu1 %v3291_v49, %s3074_s2  ;;  %974 = vrot.lane.b32.xlu0 %v3293_v50, %s3076_s30 }
 0x293   :  { %986 = vrot.lane.b32.xlu0 %v3293_v50, %s3073_s0  ;;  %976 = vrot.lane.b32.xlu1 %v3299_v52, %s3076_s30 }
 0x297   :  { %998 = vrot.lane.b32.xlu0 %v3293_v50, %s3074_s2  ;;  %988 = vrot.lane.b32.xlu1 %v3299_v52, %s3073_s0 }
 0x29b   :  { %1014 = vrot.lane.b32.xlu0 %v3297_v51, %s3076_s30  ;;  %1000 = vrot.lane.b32.xlu1 %v3299_v52, %s3074_s2 }
 0x29f   :  { %1026 = vrot.lane.b32.xlu0 %v3297_v51, %s3073_s0  ;;  %1016 = vrot.lane.b32.xlu1 %v3304_v53, %s3076_s30 }
 0x2a3   :  { %1038 = vrot.lane.b32.xlu0 %v3297_v51, %s3074_s2  ;;  %1028 = vrot.lane.b32.xlu1 %v3304_v53, %s3073_s0 }
 0x2a7   :  { %1040 = vrot.lane.b32.xlu1 %v3304_v53, %s3074_s2 }
 0x2e9   :  { %v971_v54 = vpop.permute.xlu0 %970 }
 0x2ed   :  { %v983_v55 = vpop.permute.xlu0 %982  ;;  %v973_v56 = vpop.permute.xlu1 %972 }
 0x2ee   :  { %v1046_v57 = vcombine.low %v943_v45, %v983_v55  ;;  %v1047_v58 = vcombine.high %v943_v45, %v983_v55 }
 0x2f0   :  { %v1054_v63 = vrot.slane %v1046_v57, %v3140_v41  ;;  %v1061_v0 = vrot.slane %v1047_v58, %v3140_v41 }
 0x2f1   :  { %v995_v59 = vpop.permute.xlu0 %994  ;;  %v985_v60 = vpop.permute.xlu1 %984 }
 0x2f2   :  { %v1062_v61 = vcombine.low %v971_v54, %v995_v59  ;;  %v1063_v62 = vcombine.high %v971_v54, %v995_v59  ;;  %v1182_v7 = vcombine.low %v949_v48, %v985_v60  ;;  %v1183_v8 = vcombine.high %v949_v48, %v985_v60 }
 0x2f4   :  { %v1070_v1 = vrot.slane %v1062_v61, %v3140_v41  ;;  %v1077_v2 = vrot.slane %v1063_v62, %v3140_v41  ;;  %v1190_v28 = vrot.slane %v1182_v7, %v3140_v41  ;;  %v1197_v30 = vrot.slane %v1183_v8, %v3140_v41 }
 0x2f5   :  { %v1011_v9 = vpop.permute.xlu0 %1010  ;;  %v997_v10 = vpop.permute.xlu1 %996 }
 0x2f6   :  { %v1110_v11 = vcombine.low %v1054_v63, %v1070_v1  ;;  %v1111_v16 = vcombine.high %v1054_v63, %v1070_v1  ;;  %v1126_v17 = vcombine.low %v1061_v0, %v1077_v2  ;;  %v1127_v18 = vcombine.high %v1061_v0, %v1077_v2 }
 0x2f7   :  { %v1198_v19 = vcombine.low %v973_v56, %v997_v10  ;;  %v1199_v21 = vcombine.high %v973_v56, %v997_v10 }
 0x2f8   :  { %v1118_v23 = vrot.slane %v1110_v11, %v3142_v46  ;;  %v1125_v24 = vrot.slane %v1111_v16, %v3142_v46  ;;  %v1134_v25 = vrot.slane %v1126_v17, %v3142_v46  ;;  %v1141_v26 = vrot.slane %v1127_v18, %v3142_v46 }
 0x2f9   :  { %v1206_v31 = vrot.slane %v1198_v19, %v3140_v41  ;;  %v1213_v12 = vrot.slane %v1199_v21, %v3140_v41  ;;  %v1023_v32 = vpop.permute.xlu0 %1022  ;;  %v3352_v33 = vpop.permute.xlu1 %1012 }
 0x2fa   :  { %v2860_v3 = vcombine.low %v1118_v23, %v1125_v24  ;;  %v2862_v4 = vcombine.high %v1118_v23, %v1125_v24  ;;  %v2864_v13 = vcombine.low %v1134_v25, %v1141_v26  ;;  %v2866_v14 = vcombine.high %v1134_v25, %v1141_v26 }
 0x2fb   :  { %v1246_v34 = vcombine.low %v1190_v28, %v1206_v31  ;;  %v1247_v5 = vcombine.high %v1190_v28, %v1206_v31  ;;  %v1262_v6 = vcombine.low %v1197_v30, %v1213_v12  ;;  %v1263_v15 = vcombine.high %v1197_v30, %v1213_v12 }
 0x2fc   :  { %v3355_v35 = vrot.slane %v2860_v3, %v3140_v41  ;;  %v3358_v20 = vrot.slane %v2862_v4, %v3140_v41  ;;  %v3361_v36 = vrot.slane %v2864_v13, %v3140_v41  ;;  %v3364_v22 = vrot.slane %v2866_v14, %v3140_v41 }
 0x2fd   :  { %v1254_v37 = vrot.slane %v1246_v34, %v3142_v46  ;;  %v1261_v27 = vrot.slane %v1247_v5, %v3142_v46  ;;  %v1270_v38 = vrot.slane %v1262_v6, %v3142_v46  ;;  %v1277_v29 = vrot.slane %v1263_v15, %v3142_v46  ;;  %v1035_v39 = vpop.permute.xlu0 %1034  ;;  %v1025_v40 = vpop.permute.xlu1 %1024 }
 0x2fe   :  { %v1654_v42 = vcombine.low %v3355_v35, %v3358_v20  ;;  %v1655_v43 = vcombine.high %v3355_v35, %v3358_v20  ;;  %v1686_v44 = vcombine.low %v3361_v36, %v3364_v22  ;;  %v1687_v45 = vcombine.high %v3361_v36, %v3364_v22 }
 0x2ff   :  { %v2868_v48 = vcombine.low %v1254_v37, %v1261_v27  ;;  %v2870_v54 = vcombine.high %v1254_v37, %v1261_v27  ;;  %v2872_v55 = vcombine.low %v1270_v38, %v1277_v29  ;;  %v2874_v56 = vcombine.high %v1270_v38, %v1277_v29 }
 0x300   :  { %v1078_v57 = vcombine.low %v3287_v47, %v1023_v32  ;;  %v1079_v58 = vcombine.high %v3287_v47, %v1023_v32  ;;  %v1094_v59 = vcombine.low %v1011_v9, %v1035_v39  ;;  %v1095_v60 = vcombine.high %v1011_v9, %v1035_v39 }
 0x301   :  { %v3381_v61 = vrot.slane %v2868_v48, %v3140_v41  ;;  %v3384_v62 = vrot.slane %v2870_v54, %v3140_v41  ;;  %v3387_v63 = vrot.slane %v2872_v55, %v3140_v41  ;;  %v3390_v0 = vrot.slane %v2874_v56, %v3140_v41  ;;  %v1037_v1 = vpop.permute.xlu1 %1036  ;;  %v3392_v2 = vpop.permute.xlu0 %974 }
 0x302   :  { %v1086_v7 = vrot.slane %v1078_v57, %v3140_v41  ;;  %v1093_v47 = vrot.slane %v1079_v58, %v3140_v41  ;;  %v1102_v8 = vrot.slane %v1094_v59, %v3140_v41  ;;  %v1109_v9 = vrot.slane %v1095_v60, %v3140_v41 }
 0x303   :  { %v1790_v10 = vcombine.low %v3381_v61, %v3384_v62  ;;  %v1791_v11 = vcombine.high %v3381_v61, %v3384_v62  ;;  %v1822_v16 = vcombine.low %v3387_v63, %v3390_v0  ;;  %v1823_v17 = vcombine.high %v3387_v63, %v3390_v0 }
 0x304   :  { %v1142_v18 = vcombine.low %v1086_v7, %v1102_v8  ;;  %v1143_v19 = vcombine.high %v1086_v7, %v1102_v8  ;;  %v1158_v21 = vcombine.low %v1093_v47, %v1109_v9  ;;  %v1159_v23 = vcombine.high %v1093_v47, %v1109_v9 }
 0x305   :  { %v1214_v24 = vcombine.low %v3291_v49, %v1025_v40  ;;  %v1215_v25 = vcombine.high %v3291_v49, %v1025_v40  ;;  %v1230_v26 = vcombine.low %v3352_v33, %v1037_v1  ;;  %v1231_v28 = vcombine.high %v3352_v33, %v1037_v1  ;;  %v987_v30 = vpop.permute.xlu0 %986  ;;  %v3410_v31 = vpop.permute.xlu1 %976 }
 0x306   :  { %v1150_v12 = vrot.slane %v1142_v18, %v3142_v46  ;;  %v1157_v32 = vrot.slane %v1143_v19, %v3142_v46  ;;  %v1166_v3 = vrot.slane %v1158_v21, %v3142_v46  ;;  %v1173_v4 = vrot.slane %v1159_v23, %v3142_v46 }
 0x307   :  { %v1222_v13 = vrot.slane %v1214_v24, %v3140_v41  ;;  %v1229_v14 = vrot.slane %v1215_v25, %v3140_v41  ;;  %v1238_v49 = vrot.slane %v1230_v26, %v3140_v41  ;;  %v1245_v34 = vrot.slane %v1231_v28, %v3140_v41 }
 0x308   :  { %v2861_v33 = vcombine.low %v1150_v12, %v1157_v32  ;;  %v2863_v5 = vcombine.high %v1150_v12, %v1157_v32  ;;  %v2865_v6 = vcombine.low %v1166_v3, %v1173_v4  ;;  %v2867_v15 = vcombine.high %v1166_v3, %v1173_v4 }
 0x309   :  { %v1278_v37 = vcombine.low %v1222_v13, %v1238_v49  ;;  %v1279_v27 = vcombine.high %v1222_v13, %v1238_v49  ;;  %v1294_v38 = vcombine.low %v1229_v14, %v1245_v34  ;;  %v1295_v29 = vcombine.high %v1229_v14, %v1245_v34  ;;  %v999_v39 = vpop.permute.xlu0 %998  ;;  %v989_v56 = vpop.permute.xlu1 %988 }
 0x30a   :  { %v3421_v40 = vrot.slane %v2861_v33, %v3140_v41  ;;  %v3424_v48 = vrot.slane %v2863_v5, %v3140_v41  ;;  %v3427_v54 = vrot.slane %v2865_v6, %v3140_v41  ;;  %v3430_v55 = vrot.slane %v2867_v15, %v3140_v41 }
 0x30b   :  { %v1286_v57 = vrot.slane %v1278_v37, %v3142_v46  ;;  %v1293_v58 = vrot.slane %v1279_v27, %v3142_v46  ;;  %v1302_v59 = vrot.slane %v1294_v38, %v3142_v46  ;;  %v1309_v60 = vrot.slane %v1295_v29, %v3142_v46 }
 0x30c   :  { %v1670_v1 = vcombine.low %v3421_v40, %v3424_v48  ;;  %v1671_v7 = vcombine.high %v3421_v40, %v3424_v48  ;;  %v1702_v47 = vcombine.low %v3427_v54, %v3430_v55  ;;  %v1703_v8 = vcombine.high %v3427_v54, %v3430_v55 }
 0x30d   :  { %v2869_v9 = vcombine.low %v1286_v57, %v1293_v58  ;;  %v2871_v18 = vcombine.high %v1286_v57, %v1293_v58  ;;  %v2873_v19 = vcombine.low %v1302_v59, %v1309_v60  ;;  %v2875_v21 = vcombine.high %v1302_v59, %v1309_v60  ;;  %v3444_v23 = vpop.permute.xlu0 %1014  ;;  %v1001_v14 = vpop.permute.xlu1 %1000 }
 0x30e   :  { %v1318_v24 = vcombine.low %v3293_v50, %v987_v30  ;;  %v1319_v25 = vcombine.high %v3293_v50, %v987_v30  ;;  %v1334_v26 = vcombine.low %v3392_v2, %v999_v39  ;;  %v1335_v28 = vcombine.high %v3392_v2, %v999_v39 }
 0x30f   :  { %v3451_v12 = vrot.slane %v2869_v9, %v3140_v41  ;;  %v3454_v32 = vrot.slane %v2871_v18, %v3140_v41  ;;  %v3457_v3 = vrot.slane %v2873_v19, %v3140_v41  ;;  %v3460_v4 = vrot.slane %v2875_v21, %v3140_v41 }
 0x310   :  { %v1326_v13 = vrot.slane %v1318_v24, %v3140_v41  ;;  %v1333_v50 = vrot.slane %v1319_v25, %v3140_v41  ;;  %v1342_v30 = vrot.slane %v1334_v26, %v3140_v41  ;;  %v1349_v2 = vrot.slane %v1335_v28, %v3140_v41 }
 0x311   :  { %v1806_v49 = vcombine.low %v3451_v12, %v3454_v32  ;;  %v1807_v34 = vcombine.high %v3451_v12, %v3454_v32  ;;  %v1838_v33 = vcombine.low %v3457_v3, %v3460_v4  ;;  %v1839_v5 = vcombine.high %v3457_v3, %v3460_v4  ;;  %v1027_v58 = vpop.permute.xlu0 %1026 }
 0x312   :  { %v1382_v6 = vcombine.low %v1326_v13, %v1342_v30  ;;  %v1383_v15 = vcombine.high %v1326_v13, %v1342_v30  ;;  %v1398_v37 = vcombine.low %v1333_v50, %v1349_v2  ;;  %v1399_v27 = vcombine.high %v1333_v50, %v1349_v2 }
 0x313   :  { %v1454_v38 = vcombine.low %v3299_v52, %v989_v56  ;;  %v1455_v29 = vcombine.high %v3299_v52, %v989_v56  ;;  %v1470_v39 = vcombine.low %v3410_v31, %v1001_v14  ;;  %v1471_v57 = vcombine.high %v3410_v31, %v1001_v14 }
 0x314   :  { %v1390_v59 = vrot.slane %v1382_v6, %v3142_v46  ;;  %v1397_v60 = vrot.slane %v1383_v15, %v3142_v46  ;;  %v1406_v9 = vrot.slane %v1398_v37, %v3142_v46  ;;  %v1413_v18 = vrot.slane %v1399_v27, %v3142_v46  ;;  %v3498_v37 = vpop.permute.xlu1 %1016 }
 0x315   :  { %v1462_v19 = vrot.slane %v1454_v38, %v3140_v41  ;;  %v1469_v21 = vrot.slane %v1455_v29, %v3140_v41  ;;  %v1478_v24 = vrot.slane %v1470_v39, %v3140_v41  ;;  %v1485_v52 = vrot.slane %v1471_v57, %v3140_v41  ;;  %v1039_v57 = vpop.permute.xlu0 %1038 }
 0x316   :  { %v2876_v56 = vcombine.low %v1390_v59, %v1397_v60  ;;  %v2878_v25 = vcombine.high %v1390_v59, %v1397_v60  ;;  %v2880_v31 = vcombine.low %v1406_v9, %v1413_v18  ;;  %v2882_v26 = vcombine.high %v1406_v9, %v1413_v18 }
 0x317   :  { %v1518_v28 = vcombine.low %v1462_v19, %v1478_v24  ;;  %v1519_v13 = vcombine.high %v1462_v19, %v1478_v24  ;;  %v1534_v50 = vcombine.low %v1469_v21, %v1485_v52  ;;  %v1535_v30 = vcombine.high %v1469_v21, %v1485_v52 }
 0x318   :  { %v3487_v2 = vrot.slane %v2876_v56, %v3140_v41  ;;  %v3490_v14 = vrot.slane %v2878_v25, %v3140_v41  ;;  %v3493_v6 = vrot.slane %v2880_v31, %v3140_v41  ;;  %v3496_v15 = vrot.slane %v2882_v26, %v3140_v41 }
 0x319   :  { %v1526_v27 = vrot.slane %v1518_v28, %v3142_v46  ;;  %v1533_v38 = vrot.slane %v1519_v13, %v3142_v46  ;;  %v1542_v29 = vrot.slane %v1534_v50, %v3142_v46  ;;  %v1549_v39 = vrot.slane %v1535_v30, %v3142_v46 }
 0x31a   :  { %v1926_v59 = vcombine.low %v3487_v2, %v3490_v14  ;;  %v1927_v60 = vcombine.high %v3487_v2, %v3490_v14  ;;  %v1958_v9 = vcombine.low %v3493_v6, %v3496_v15  ;;  %v1959_v18 = vcombine.high %v3493_v6, %v3496_v15 }
 0x31b   :  { %v2884_v19 = vcombine.low %v1526_v27, %v1533_v38  ;;  %v2886_v21 = vcombine.high %v1526_v27, %v1533_v38  ;;  %v2888_v24 = vcombine.low %v1542_v29, %v1549_v39  ;;  %v2890_v52 = vcombine.high %v1542_v29, %v1549_v39  ;;  %v1029_v38 = vpop.permute.xlu1 %1028 }
 0x31c   :  { %v1350_v56 = vcombine.low %v3297_v51, %v1027_v58  ;;  %v1351_v25 = vcombine.high %v3297_v51, %v1027_v58  ;;  %v1366_v31 = vcombine.low %v3444_v23, %v1039_v57  ;;  %v1367_v26 = vcombine.high %v3444_v23, %v1039_v57 }
 0x31d   :  { %v3517_v28 = vrot.slane %v2884_v19, %v3140_v41  ;;  %v3520_v13 = vrot.slane %v2886_v21, %v3140_v41  ;;  %v3523_v50 = vrot.slane %v2888_v24, %v3140_v41  ;;  %v3526_v30 = vrot.slane %v2890_v52, %v3140_v41 }
 0x31e   :  { %v1358_v27 = vrot.slane %v1350_v56, %v3140_v41  ;;  %v1365_v51 = vrot.slane %v1351_v25, %v3140_v41  ;;  %v1374_v58 = vrot.slane %v1366_v31, %v3140_v41  ;;  %v1381_v23 = vrot.slane %v1367_v26, %v3140_v41 }
 0x31f   :  { %v1486_v25 = vcombine.low %v3304_v53, %v1029_v38  ;;  %v1487_v31 = vcombine.high %v3304_v53, %v1029_v38  ;;  %v1662_v26 = vrot.slane %v1654_v42, %v3142_v46  ;;  %v1669_v39 = vrot.slane %v1655_v43, %v3142_v46 }
 0x320   :  { %v1414_v21 = vcombine.low %v1358_v27, %v1374_v58  ;;  %v1415_v24 = vcombine.high %v1358_v27, %v1374_v58  ;;  %v1430_v52 = vcombine.low %v1365_v51, %v1381_v23  ;;  %v1431_v56 = vcombine.high %v1365_v51, %v1381_v23 }
 0x321   :  { %v1494_v53 = vrot.slane %v1486_v25, %v3140_v41  ;;  %v1501_v23 = vrot.slane %v1487_v31, %v3140_v41  ;;  %v1678_v42 = vrot.slane %v1670_v1, %v3142_v46  ;;  %v1685_v35 = vrot.slane %v1671_v7, %v3142_v46 }
 0x322   :  { %v1422_v29 = vrot.slane %v1414_v21, %v3142_v46  ;;  %v1429_v27 = vrot.slane %v1415_v24, %v3142_v46  ;;  %v1438_v51 = vrot.slane %v1430_v52, %v3142_v46  ;;  %v1445_v58 = vrot.slane %v1431_v56, %v3142_v46 }
 0x323   :  { %v2892_v24 = vcombine.low %v1662_v26, %v1669_v39  ;;  %v2894_v52 = vcombine.high %v1662_v26, %v1669_v39  ;;  %v2896_v56 = vcombine.low %v1678_v42, %v1685_v35  ;;  %v2898_v25 = vcombine.high %v1678_v42, %v1685_v35  ;;  %v1041_v26 = vpop.permute.xlu1 %1040 }
 0x324   :  { %v2877_v20 = vcombine.low %v1422_v29, %v1429_v27  ;;  %v2879_v43 = vcombine.high %v1422_v29, %v1429_v27  ;;  %v2881_v38 = vcombine.low %v1438_v51, %v1445_v58  ;;  %v2883_v21 = vcombine.high %v1438_v51, %v1445_v58 }
 0x325   :  { %v2142_v48 = vrot.slane %v2892_v24, %v3140_v41  ;;  %v2158_v7 = vrot.slane %v2894_v52, %v3140_v41  ;;  %v2174_v29 = vrot.slane %v2896_v56, %v3140_v41  ;;  %v2190_v39 = vrot.slane %v2898_v25, %v3140_v41 }
 0x326   :  { %v3565_v31 = vrot.slane %v2877_v20, %v3140_v41  ;;  %v3568_v19 = vrot.slane %v2879_v43, %v3140_v41  ;;  %v3571_v1 = vrot.slane %v2881_v38, %v3140_v41  ;;  %v3574_v40 = vrot.slane %v2883_v21, %v3140_v41 }
 0x327   :  { %v2198_v35 = vcombine.low %v2142_v48, %v2158_v7  ;;  %v2230_v20 = vcombine.low %v2174_v29, %v2190_v39  ;;  %v1694_v43 = vrot.slane %v1686_v44, %v3142_v46  ;;  %v1701_v38 = vrot.slane %v1687_v45, %v3142_v46 }
 0x328   :  { %v1942_v27 = vcombine.low %v3565_v31, %v3568_v19  ;;  %v1943_v51 = vcombine.high %v3565_v31, %v3568_v19  ;;  %v1710_v21 = vrot.slane %v1702_v47, %v3142_v46  ;;  %v1717_v24 = vrot.slane %v1703_v8, %v3142_v46 }
 0x329   :  { %v1502_v52 = vcombine.low %v3498_v37, %v1041_v26  ;;  %v1503_v56 = vcombine.high %v3498_v37, %v1041_v26  ;;  %v3607_v44 = vrot.slane %v2198_v35, %v3142_v46  ;;  %v3610_v36 = vrot.slane %v2230_v20, %v3142_v46 }
 0x32a   :  { %v2893_v22 = vcombine.low %v1694_v43, %v1701_v38  ;;  %v2895_v45 = vcombine.high %v1694_v43, %v1701_v38  ;;  %v2897_v25 = vcombine.low %v1710_v21, %v1717_v24  ;;  %v2899_v57 = vcombine.high %v1710_v21, %v1717_v24 }
 0x32b   :  { %v1510_v47 = vrot.slane %v1502_v52, %v3140_v41  ;;  %v1517_v42 = vrot.slane %v1503_v56, %v3140_v41  ;;  %v2263_v54 = vcombine.high %v3607_v44, %v3610_v36  ;;  %v2199_v37 = vcombine.high %v2142_v48, %v2158_v7 }
 0x32c   :  { %v2149_v55 = vrot.slane %v2893_v22, %v3140_v41  ;;  %v2165_v8 = vrot.slane %v2895_v45, %v3140_v41  ;;  %v2181_v26 = vrot.slane %v2897_v25, %v3140_v41  ;;  %v2197_v35 = vrot.slane %v2899_v57, %v3140_v41 }
 0x32d   :  { %v1550_v20 = vcombine.low %v1494_v53, %v1510_v47  ;;  %v1551_v43 = vcombine.high %v1494_v53, %v1510_v47  ;;  %2679 = vrot.lane.b32.xlu0 %v2263_v54, %s3074_s2  ;;  %v1566_v21 = vcombine.low %v1501_v23, %v1517_v42  ;;  %v1567_v24 = vcombine.high %v1501_v23, %v1517_v42 }
 0x32e   :  { %v2214_v38 = vcombine.low %v2149_v55, %v2165_v8  ;;  %v2213_v52 = vrot.slane %v2199_v37, %v3142_v46  ;;  %v2246_v56 = vcombine.low %v2181_v26, %v2197_v35  ;;  %v2231_v45 = vcombine.high %v2174_v29, %v2190_v39 }
 0x32f   :  { %v1558_v58 = vrot.slane %v1550_v20, %v3142_v46  ;;  %v1565_v22 = vrot.slane %v1551_v43, %v3142_v46  ;;  %v1574_v57 = vrot.slane %v1566_v21, %v3142_v46  ;;  %v1581_v53 = vrot.slane %v1567_v24, %v3142_v46 }
 0x330   :  { %v3625_v48 = vrot.slane %v2214_v38, %v3142_v46  ;;  %v2215_v7 = vcombine.high %v2149_v55, %v2165_v8  ;;  %v3630_v25 = vrot.slane %v2246_v56, %v3142_v46  ;;  %v2245_v47 = vrot.slane %v2231_v45, %v3142_v46 }
 0x331   :  { %v2885_v23 = vcombine.low %v1558_v58, %v1565_v22  ;;  %v2887_v42 = vcombine.high %v1558_v58, %v1565_v22  ;;  %v2889_v54 = vcombine.low %v1574_v57, %v1581_v53  ;;  %v2891_v37 = vcombine.high %v1574_v57, %v1581_v53 }
 0x332   :  { %v2229_v20 = vrot.slane %v2215_v7, %v3142_v46  ;;  %v2247_v29 = vcombine.high %v2181_v26, %v2197_v35  ;;  %v2267_v39 = vcombine.high %v3625_v48, %v3630_v25  ;;  %v2264_v8 = vcombine.low %v2213_v52, %v2245_v47 }
 0x333   :  { %v3637_v43 = vrot.slane %v2885_v23, %v3140_v41  ;;  %v3640_v55 = vrot.slane %v2887_v42, %v3140_v41  ;;  %v3643_v38 = vrot.slane %v2889_v54, %v3140_v41  ;;  %v3646_v58 = vrot.slane %v2891_v37, %v3140_v41 }
 0x334   :  { %v2261_v21 = vrot.slane %v2247_v29, %v3142_v46  ;;  %v2265_v24 = vcombine.high %v2213_v52, %v2245_v47  ;;  %2691 = vrot.lane.b32.xlu1 %v2267_v39, %s3074_s2  ;;  %2683 = vrot.lane.b32.xlu0 %v2264_v8, %s3073_s0  ;;  %v1798_v56 = vrot.slane %v1790_v10, %v3142_v46 }
 0x335   :  { %v2078_v26 = vcombine.low %v3637_v43, %v3640_v55  ;;  %v2079_v35 = vcombine.high %v3637_v43, %v3640_v55  ;;  %v2110_v22 = vcombine.low %v3643_v38, %v3646_v58  ;;  %v2111_v52 = vcombine.high %v3643_v38, %v3646_v58 }
 0x336   :  { %v2268_v45 = vcombine.low %v2229_v20, %v2261_v21  ;;  %v2269_v57 = vcombine.high %v2229_v20, %v2261_v21  ;;  %v1805_v53 = vrot.slane %v1791_v11, %v3142_v46  ;;  %v1814_v7 = vrot.slane %v1806_v49, %v3142_v46 }
 0x337   :  { %v1821_v10 = vrot.slane %v1807_v34, %v3142_v46  ;;  %v1830_v23 = vrot.slane %v1822_v16, %v3142_v46  ;;  %v1837_v61 = vrot.slane %v1823_v17, %v3142_v46  ;;  %v1846_v62 = vrot.slane %v1838_v33, %v3142_v46 }
 0x338   :  { %v1853_v11 = vrot.slane %v1839_v5, %v3142_v46  ;;  %v1934_v16 = vrot.slane %v1926_v59, %v3142_v46  ;;  %2695 = vrot.lane.b32.xlu1 %v2268_v45, %s3073_s0  ;;  %2687 = vrot.lane.b32.xlu0 %v2265_v24, %s3076_s30  ;;  %v2900_v63 = vcombine.low %v1798_v56, %v1805_v53 }
 0x339   :  { %v2902_v0 = vcombine.high %v1798_v56, %v1805_v53  ;;  %v2904_v17 = vcombine.low %v1814_v7, %v1821_v10  ;;  %v2906_v12 = vcombine.high %v1814_v7, %v1821_v10  ;;  %v2901_v32 = vcombine.low %v1830_v23, %v1837_v61 }
 0x33a   :  { %v2903_v49 = vcombine.high %v1830_v23, %v1837_v61  ;;  %v2905_v34 = vcombine.low %v1846_v62, %v1853_v11  ;;  %v2278_v33 = vrot.slane %v2900_v63, %v3140_v41  ;;  %v2907_v5 = vcombine.high %v1846_v62, %v1853_v11 }
 0x33b   :  { %v2294_v3 = vrot.slane %v2902_v0, %v3140_v41  ;;  %v2310_v4 = vrot.slane %v2904_v17, %v3140_v41  ;;  %v2326_v59 = vrot.slane %v2906_v12, %v3140_v41  ;;  %v2285_v42 = vrot.slane %v2901_v32, %v3140_v41 }
 0x33c   :  { %v2301_v47 = vrot.slane %v2903_v49, %v3140_v41  ;;  %v2317_v54 = vrot.slane %v2905_v34, %v3140_v41  ;;  %2699 = vrot.lane.b32.xlu1 %v2269_v57, %s3076_s30  ;;  %v2333_v20 = vrot.slane %v2907_v5, %v3140_v41  ;;  %v1941_v39 = vrot.slane %v1927_v60, %v3142_v46 }
 0x33d   :  { %v2334_v37 = vcombine.low %v2278_v33, %v2294_v3  ;;  %v2335_v29 = vcombine.high %v2278_v33, %v2294_v3  ;;  %v2366_v8 = vcombine.low %v2310_v4, %v2326_v59  ;;  %v2367_v24 = vcombine.high %v2310_v4, %v2326_v59 }
 0x33e   :  { %v2350_v21 = vcombine.low %v2285_v42, %v2301_v47  ;;  %v2351_v56 = vcombine.high %v2285_v42, %v2301_v47  ;;  %v2382_v53 = vcombine.low %v2317_v54, %v2333_v20  ;;  %v2383_v57 = vcombine.high %v2317_v54, %v2333_v20 }
 0x33f   :  { %v3711_v45 = vrot.slane %v2334_v37, %v3142_v46  ;;  %v2349_v7 = vrot.slane %v2335_v29, %v3142_v46  ;;  %v3715_v10 = vrot.slane %v2366_v8, %v3142_v46  ;;  %v2381_v2 = vrot.slane %v2367_v24, %v3142_v46 }
 0x340   :  { %v3718_v23 = vrot.slane %v2350_v21, %v3142_v46  ;;  %v2365_v14 = vrot.slane %v2351_v56, %v3142_v46  ;;  %v3723_v60 = vrot.slane %v2382_v53, %v3142_v46  ;;  %v2397_v61 = vrot.slane %v2383_v57, %v3142_v46 }
 0x341   :  { %v1950_v62 = vrot.slane %v1942_v27, %v3142_v46  ;;  %v1957_v11 = vrot.slane %v1943_v51, %v3142_v46  ;;  %v2399_v63 = vcombine.high %v3711_v45, %v3715_v10  ;;  %v2400_v0 = vcombine.low %v2349_v7, %v2381_v2 }
 0x342   :  { %v2401_v17 = vcombine.high %v2349_v7, %v2381_v2  ;;  %v2908_v12 = vcombine.low %v1934_v16, %v1941_v39  ;;  %v2403_v32 = vcombine.high %v3718_v23, %v3723_v60  ;;  %v2404_v49 = vcombine.low %v2365_v14, %v2397_v61 }
 0x343   :  { %v2405_v34 = vcombine.high %v2365_v14, %v2397_v61  ;;  %v2910_v33 = vcombine.high %v1934_v16, %v1941_v39  ;;  %2703 = vrot.lane.b32.xlu0 %v2399_v63, %s3074_s2  ;;  %v2912_v3 = vcombine.low %v1950_v62, %v1957_v11  ;;  %v2914_v4 = vcombine.high %v1950_v62, %v1957_v11 }
 0x344   :  { %v2414_v27 = vrot.slane %v2908_v12, %v3140_v41  ;;  %v1966_v19 = vrot.slane %v1958_v9, %v3142_v46  ;;  %2715 = vrot.lane.b32.xlu1 %v2403_v32, %s3074_s2  ;;  %v1973_v51 = vrot.slane %v1959_v18, %v3142_v46  ;;  %v3916_v16 = vcombine.low %v3571_v1, %v3574_v40 }
 0x345   :  { %v2430_v31 = vrot.slane %v2910_v33, %v3140_v41  ;;  %v3917_v59 = vcombine.high %v3571_v1, %v3574_v40  ;;  %v2446_v9 = vrot.slane %v2912_v3, %v3140_v41  ;;  %v2462_v47 = vrot.slane %v2914_v4, %v3140_v41 }
 0x346   :  { %v1982_v5 = vrot.slane %v3916_v16, %v3142_v46  ;;  %v3918_v54 = vcombine.low %v3523_v50, %v3526_v30  ;;  %v3919_v15 = vcombine.high %v3523_v50, %v3526_v30  ;;  %v2909_v20 = vcombine.low %v1966_v19, %v1973_v51 }
 0x347   :  { %v1989_v42 = vrot.slane %v3917_v59, %v3142_v46  ;;  %v2470_v37 = vcombine.low %v2414_v27, %v2430_v31  ;;  %v2911_v29 = vcombine.high %v1966_v19, %v1973_v51  ;;  %2707 = vrot.lane.b32.xlu0 %v2400_v0, %s3073_s0  ;;  %v2502_v1 = vcombine.low %v2446_v9, %v2462_v47 }
 0x348   :  { %v2102_v6 = vrot.slane %v3918_v54, %v3142_v46  ;;  %v2109_v18 = vrot.slane %v3919_v15, %v3142_v46  ;;  %v2471_v8 = vcombine.high %v2414_v27, %v2430_v31  ;;  %v2503_v21 = vcombine.high %v2446_v9, %v2462_v47  ;;  %2719 = vrot.lane.b32.xlu1 %v2404_v49, %s3073_s0 }
 0x349   :  { %v2913_v39 = vcombine.low %v1982_v5, %v1989_v42  ;;  %v2915_v40 = vcombine.high %v1982_v5, %v1989_v42  ;;  %v3771_v24 = vrot.slane %v2470_v37, %v3142_v46  ;;  %v2421_v56 = vrot.slane %v2909_v20, %v3140_v41 }
 0x34a   :  { %v2437_v50 = vrot.slane %v2911_v29, %v3140_v41  ;;  %v3777_v53 = vrot.slane %v2502_v1, %v3142_v46  ;;  %v2485_v57 = vrot.slane %v2471_v8, %v3142_v46  ;;  %v2517_v2 = vrot.slane %v2503_v21, %v3142_v46 }
 0x34b   :  { %v2453_v30 = vrot.slane %v2913_v39, %v3140_v41  ;;  %v2469_v7 = vrot.slane %v2915_v40, %v3140_v41  ;;  %v2118_v62 = vrot.slane %v2110_v22, %v3142_v46  ;;  %v2125_v11 = vrot.slane %v2111_v52, %v3142_v46  ;;  %2711 = vrot.lane.b32.xlu0 %v2401_v17, %s3076_s30 }
 0x34c   :  { %v2486_v14 = vcombine.low %v2421_v56, %v2437_v50  ;;  %v2487_v61 = vcombine.high %v2421_v56, %v2437_v50  ;;  %v2535_v63 = vcombine.high %v3771_v24, %v3777_v53  ;;  %v2536_v12 = vcombine.low %v2485_v57, %v2517_v2  ;;  %2723 = vrot.lane.b32.xlu1 %v2405_v34, %s3076_s30 }
 0x34d   :  { %v2518_v0 = vcombine.low %v2453_v30, %v2469_v7  ;;  %v2519_v32 = vcombine.high %v2453_v30, %v2469_v7  ;;  %v2537_v33 = vcombine.high %v2485_v57, %v2517_v2  ;;  %v2917_v27 = vcombine.low %v2102_v6, %v2109_v18 }
 0x34e   :  { %v3795_v49 = vrot.slane %v2486_v14, %v3142_v46  ;;  %v2501_v22 = vrot.slane %v2487_v61, %v3142_v46  ;;  %v2919_v52 = vcombine.high %v2102_v6, %v2109_v18  ;;  %v2921_v17 = vcombine.low %v2118_v62, %v2125_v11 }
 0x34f   :  { %v3799_v38 = vrot.slane %v2518_v0, %v3142_v46  ;;  %v2533_v58 = vrot.slane %v2519_v32, %v3142_v46  ;;  %v2557_v3 = vrot.slane %v2917_v27, %v3140_v41  ;;  %v2923_v4 = vcombine.high %v2118_v62, %v2125_v11  ;;  %2727 = vrot.lane.b32.xlu0 %v2535_v63, %s3074_s2 }
 0x350   :  { %v3920_v34 = vcombine.low %v3517_v28, %v3520_v13  ;;  %v3921_v31 = vcombine.high %v3517_v28, %v3520_v13  ;;  %v2573_v42 = vrot.slane %v2919_v52, %v3140_v41  ;;  %v2589_v9 = vrot.slane %v2921_v17, %v3140_v41 }
 0x351   :  { %v2539_v16 = vcombine.high %v3795_v49, %v3799_v38  ;;  %v2540_v5 = vcombine.low %v2501_v22, %v2533_v58  ;;  %v2541_v59 = vcombine.high %v2501_v22, %v2533_v58  ;;  %v2605_v47 = vrot.slane %v2923_v4, %v3140_v41 }
 0x352   :  { %v2070_v19 = vrot.slane %v3920_v34, %v3142_v46  ;;  %v2077_v51 = vrot.slane %v3921_v31, %v3142_v46  ;;  %v2086_v54 = vrot.slane %v2078_v26, %v3142_v46  ;;  %v2093_v28 = vrot.slane %v2079_v35, %v3142_v46 }
 0x353   :  { %2739 = vrot.lane.b32.xlu1 %v2539_v16, %s3074_s2  ;;  %v2622_v13 = vcombine.low %v2557_v3, %v2573_v42  ;;  %v2623_v18 = vcombine.high %v2557_v3, %v2573_v42  ;;  %v2654_v37 = vcombine.low %v2589_v9, %v2605_v47  ;;  %v2655_v39 = vcombine.high %v2589_v9, %v2605_v47 }
 0x354   :  { %v2916_v6 = vcombine.low %v2070_v19, %v2077_v51  ;;  %v2918_v15 = vcombine.high %v2070_v19, %v2077_v51  ;;  %v2920_v20 = vcombine.low %v2086_v54, %v2093_v28  ;;  %v2922_v29 = vcombine.high %v2086_v54, %v2093_v28  ;;  %2731 = vrot.lane.b32.xlu0 %v2536_v12, %s3073_s0 }
 0x355   :  { %v3828_v1 = vrot.slane %v2622_v13, %v3142_v46  ;;  %v2637_v55 = vrot.slane %v2623_v18, %v3142_v46  ;;  %v3834_v35 = vrot.slane %v2654_v37, %v3142_v46  ;;  %v2669_v21 = vrot.slane %v2655_v39, %v3142_v46 }
 0x356   :  { %v2550_v26 = vrot.slane %v2916_v6, %v3140_v41  ;;  %v2566_v43 = vrot.slane %v2918_v15, %v3140_v41  ;;  %v2582_v40 = vrot.slane %v2920_v20, %v3140_v41  ;;  %v2598_v8 = vrot.slane %v2922_v29, %v3140_v41 }
 0x357   :  { %2743 = vrot.lane.b32.xlu1 %v2540_v5, %s3073_s0  ;;  %v2262_v30 = vcombine.low %v3607_v44, %v3610_v36  ;;  %v2266_v7 = vcombine.low %v3625_v48, %v3630_v25  ;;  %v2675_v57 = vcombine.high %v3828_v1, %v3834_v35  ;;  %v2676_v14 = vcombine.low %v2637_v55, %v2669_v21 }
 0x358   :  { %v2606_v56 = vcombine.low %v2550_v26, %v2566_v43  ;;  %v2607_v50 = vcombine.high %v2550_v26, %v2566_v43  ;;  %v2638_v2 = vcombine.low %v2582_v40, %v2598_v8  ;;  %v2639_v61 = vcombine.high %v2582_v40, %v2598_v8  ;;  %2735 = vrot.lane.b32.xlu0 %v2537_v33, %s3076_s30 }
 0x359   :  { %v2677_v11 = vcombine.high %v2637_v55, %v2669_v21  ;;  %v2398_v44 = vcombine.low %v3711_v45, %v3715_v10  ;;  %v2402_v25 = vcombine.low %v3718_v23, %v3723_v60  ;;  %v2534_v63 = vcombine.low %v3771_v24, %v3777_v53 }
 0x35a   :  { %v3848_v41 = vrot.slane %v2606_v56, %v3142_v46  ;;  %v2621_v62 = vrot.slane %v2607_v50, %v3142_v46  ;;  %v3854_v36 = vrot.slane %v2638_v2, %v3142_v46  ;;  %v2653_v48 = vrot.slane %v2639_v61, %v3142_v46 }
 0x35b   :  { %2747 = vrot.lane.b32.xlu1 %v2541_v59, %s3076_s30  ;;  %v2538_v0 = vcombine.low %v3795_v49, %v3799_v38  ;;  %v2674_v12 = vcombine.low %v3828_v1, %v3834_v35 }
 0x35c   :  { %v2671_v45 = vcombine.high %v3848_v41, %v3854_v36  ;;  %v2672_v10 = vcombine.low %v2621_v62, %v2653_v48  ;;  %v2673_v32 = vcombine.high %v2621_v62, %v2653_v48  ;;  %v2670_v46 = vcombine.low %v3848_v41, %v3854_v36 }
 0x35e   :  { %2751 = vrot.lane.b32.xlu0 %v2671_v45, %s3074_s2 }
 0x35f   :  { %2763 = vrot.lane.b32.xlu1 %v2675_v57, %s3074_s2 }
 0x362   :  { %2755 = vrot.lane.b32.xlu0 %v2672_v10, %s3073_s0 }
 0x363   :  { %2767 = vrot.lane.b32.xlu1 %v2676_v14, %s3073_s0 }
 0x366   :  { %2759 = vrot.lane.b32.xlu0 %v2673_v32, %s3076_s30 }
 0x367   :  { %2771 = vrot.lane.b32.xlu1 %v2677_v11, %s3076_s30 }
 0x39f   :  { %v2680_v23 = vpop.permute.xlu0 %2679 }
 0x3a0   :  { %v2775_v53 = vsel %vm837_vm1, %v2262_v30, %v2680_v23 }
 0x3a6   :  { %v2692_v60 = vpop.permute.xlu1 %2691  ;;  %v2684_v24 = vpop.permute.xlu0 %2683 }
 0x3a7   :  { %v2777_v49 = vsel %vm840_vm2, %v2775_v53, %v2684_v24  ;;  %v2780_v38 = vsel %vm837_vm1, %v2266_v7, %v2692_v60 }
 0x3aa   :  { %v2696_v22 = vpop.permute.xlu1 %2695  ;;  %v2688_v33 = vpop.permute.xlu0 %2687 }
 0x3ab   :  { %v2779_v27 = vsel %vm843_vm3, %v2777_v49, %v2688_v33  ;;  %v2781_v58 = vsel %vm840_vm2, %v2780_v38, %v2696_v22 }
 0x3ac   :  { %2801 = vst [vmem:[#allocation6] sm:$0xff] %v2779_v27 }
 0x3ae   :  { %v2700_v52 = vpop.permute.xlu1 %2699 }
 0x3af   :  { %v2782_v17 = vsel %vm843_vm3, %v2781_v58, %v2700_v52 }
 0x3b0   :  { %2802 = vst [vmem:[#allocation6 + $0x8] sm:$0xff] %v2782_v17 }
 0x3b5   :  { %v2704_v3 = vpop.permute.xlu0 %2703 }
 0x3b6   :  { %v2716_v4 = vpop.permute.xlu1 %2715  ;;  %v2783_v31 = vsel %vm837_vm1, %v2398_v44, %v2704_v3 }
 0x3b7   :  { %v2786_v51 = vsel %vm837_vm1, %v2402_v25, %v2716_v4 }
 0x3b9   :  { %v2708_v34 = vpop.permute.xlu0 %2707 }
 0x3ba   :  { %v2720_v19 = vpop.permute.xlu1 %2719  ;;  %v2784_v16 = vsel %vm840_vm2, %v2783_v31, %v2708_v34 }
 0x3bb   :  { %v2787_v59 = vsel %vm840_vm2, %v2786_v51, %v2720_v19 }
 0x3bd   :  { %v2712_v5 = vpop.permute.xlu0 %2711 }
 0x3be   :  { %v2785_v42 = vsel %vm843_vm3, %v2784_v16, %v2712_v5  ;;  %v2724_v9 = vpop.permute.xlu1 %2723 }
 0x3bf   :  { %2803 = vst [vmem:[#allocation6 + $0x10] sm:$0xff] %v2785_v42  ;;  %v2788_v47 = vsel %vm843_vm3, %v2787_v59, %v2724_v9 }
 0x3c0   :  { %2804 = vst [vmem:[#allocation6 + $0x18] sm:$0xff] %v2788_v47 }
 0x3c1   :  { %v2728_v54 = vpop.permute.xlu0 %2727 }
 0x3c2   :  { %v2789_v15 = vsel %vm837_vm1, %v2534_v63, %v2728_v54 }
 0x3c5   :  { %v2740_v28 = vpop.permute.xlu1 %2739 }
 0x3c6   :  { %v2732_v13 = vpop.permute.xlu0 %2731  ;;  %v2792_v20 = vsel %vm837_vm1, %v2538_v0, %v2740_v28 }
 0x3c7   :  { %v2790_v18 = vsel %vm840_vm2, %v2789_v15, %v2732_v13 }
 0x3c9   :  { %v2744_v6 = vpop.permute.xlu1 %2743 }
 0x3ca   :  { %v2736_v37 = vpop.permute.xlu0 %2735  ;;  %v2793_v39 = vsel %vm840_vm2, %v2792_v20, %v2744_v6 }
 0x3cb   :  { %v2791_v29 = vsel %vm843_vm3, %v2790_v18, %v2736_v37 }
 0x3cc   :  { %2805 = vst [vmem:[#allocation6 + $0x20] sm:$0xff] %v2791_v29 }
 0x3cd   :  { %v2748_v1 = vpop.permute.xlu1 %2747 }
 0x3ce   :  { %v2794_v26 = vsel %vm843_vm3, %v2793_v39, %v2748_v1 }
 0x3cf   :  { %2806 = vst [vmem:[#allocation6 + $0x28] sm:$0xff] %v2794_v26 }
 0x3d0   :  { %v2752_v43 = vpop.permute.xlu0 %2751 }
 0x3d1   :  { %v2764_v55 = vpop.permute.xlu1 %2763  ;;  %v2795_v8 = vsel %vm837_vm1, %v2670_v46, %v2752_v43 }
 0x3d2   :  { %v2798_v21 = vsel %vm837_vm1, %v2674_v12, %v2764_v55 }
 0x3d4   :  { %v2756_v35 = vpop.permute.xlu0 %2755 }
 0x3d5   :  { %v2768_v40 = vpop.permute.xlu1 %2767  ;;  %v2796_v56 = vsel %vm840_vm2, %v2795_v8, %v2756_v35 }
 0x3d6   :  { %v2799_v30 = vsel %vm840_vm2, %v2798_v21, %v2768_v40 }
 0x3d8   :  { %v2760_v50 = vpop.permute.xlu0 %2759 }
 0x3d9   :  { %v2797_v7 = vsel %vm843_vm3, %v2796_v56, %v2760_v50  ;;  %v2772_v57 = vpop.permute.xlu1 %2771 }
 0x3da   :  { %2807 = vst [vmem:[#allocation6 + $0x30] sm:$0xff] %v2797_v7  ;;  %v2800_v2 = vsel %vm843_vm3, %v2799_v30, %v2772_v57 }
 0x3db   :  { %2808 = vst [vmem:[#allocation6 + $0x38] sm:$0xff] %v2800_v2 }
 0x3dc   :  { %3053 = shalt.err (!%p3050_p12)
}
 0x3dd   :  { %s3054_s16 = scalar_lea.hbm %s3915_s3, 1024 }
 0x3de   :  { %p3055_p13 = scmp.ne.s32.totalorder %s3915_s3, %s3054_s16  ;;  %p3058_p0 = scmp.lt.u32.totalorder %s3054_s16, %s3915_s3 }
 0x3e0   :  { %p3060_p1 = pnand %p3058_p0, %p3055_p13 }
 0x3e2   :  { %3063 = shalt.err (!%p3060_p1)
}
 0x3e3   :  { %2818 = dma.vmem_to_hbm [thread:$0]  %s2816_s12, 1024, %s3915_s3, [#allocation5]  }
 0x3e4   :  { %3066 = dma.done.wait [#allocation5], 1024  }
 0x3e5   :  { %3067 = vsyncadd [#allocation5], 4294966272 }
 0x3e6   :  { %2822 = vsyncpa [#allocation4], 1 }
 0x3e7   :  { %2823 = vsyncpa [#allocation5], 1 }

</bundles_post_ra>
